<compile_context>
chip_gen: v7x
topology: tpu7x:2x2x1
jax: 0.10.0
libtpu: 0.0.40
codegen_flags: <defaults>
</compile_context>

<pallas_src>
import functools
import math

import jax
import jax.numpy as jnp
from jax.experimental import pallas as pl
from jax.experimental.pallas import tpu as pltpu


# ---------------------------- Pallas kernel ----------------------------

def _self_attention_kernel(v_ref, k_ref, q_ref, m_ref,
                           wv_ref, wk_ref, wq_ref, wo_ref, bo_ref,
                           o_ref, *, heads, inv_scale):
    # One batch element per grid step.
    v = v_ref[0]          # (Lv, E)
    k = k_ref[0]          # (Lk, E)
    q = q_ref[0]          # (Lq, E)
    m = m_ref[0]          # (Lq, Lk), shared across heads

    # Full-embed, lane-dense projections (block-diagonal per-head weights).
    vp = jnp.dot(v, wv_ref[...], preferred_element_type=jnp.float32)
    kp = jnp.dot(k, wk_ref[...], preferred_element_type=jnp.float32)
    qp = jnp.dot(q, wq_ref[...], preferred_element_type=jnp.float32)

    E = qp.shape[-1]
    D = E // heads
    neg_big = jnp.float32(-1e20)

    ctx_parts = []
    for h in range(heads):                       # heads is tiny -> unrolled
        lo = h * D
        qh = qp[:, lo:lo + D]                    # (Lq, D)
        kh = kp[:, lo:lo + D]                    # (Lk, D)
        vh = vp[:, lo:lo + D]                    # (Lk, D)

        # energy = qh @ kh^T (contract on head_dim)
        energy = jax.lax.dot_general(qh, kh, (((1,), (1,)), ((), ())),
                                     preferred_element_type=jnp.float32)
        # masked_fill(mask == 0, -1e20) THEN divide by sqrt(embed_size),
        # exactly like the PyTorch module.
        energy = jnp.where(m == 0.0, neg_big, energy)
        logits = energy * inv_scale
        logits = logits - jnp.max(logits, axis=-1, keepdims=True)
        p = jnp.exp(logits)
        inv_den = pl.reciprocal(jnp.sum(p, axis=-1, keepdims=True), approx=True)
        att = p * inv_den                        # softmax
        ctx_parts.append(jnp.dot(att, vh, preferred_element_type=jnp.float32))

    ctx = jnp.concatenate(ctx_parts, axis=-1)    # (Lq, E) -- lane-dense

    out = jnp.dot(ctx, wo_ref[...], preferred_element_type=jnp.float32) + bo_ref[...]
    o_ref[0] = out.astype(o_ref.dtype)


# ---------------------------- wrapper (glue + pallas_call) ----------------------------

def self_attention(values, keys, query, mask, params, embed_size, heads):
    """values/keys: (N, Lk, E); query: (N, Lq, E); mask: (N, 1, Lq, Lk) or (N, Lq, Lk)."""
    N, Lq, E = query.shape
    Lk = keys.shape[1]
    Lv = values.shape[1]
    D = E // heads
    assert D * heads == E, "Embed size needs to be divisible by heads"

    # Per-head Linear(D, D, bias=False) applied to the full embed dim as a
    # block-diagonal (E, E) weight: y_full = x_full @ kron(I_heads, W^T).
    eye = jnp.eye(heads, dtype=jnp.float32)
    wv_bd = jnp.kron(eye, params['Wv'].T)
    wk_bd = jnp.kron(eye, params['Wk'].T)
    wq_bd = jnp.kron(eye, params['Wq'].T)
    wo_t = params['Wfc'].T
    bo = params['bfc'].reshape(1, E)

    # Mask shared across heads: keep it (N, Lq, Lk) in HBM (no heads× broadcast).
    if mask.ndim == 4:
        mask3 = jnp.broadcast_to(mask[:, 0], (N, Lq, Lk))
    else:
        mask3 = jnp.broadcast_to(mask, (N, Lq, Lk))
    mask3 = mask3.astype(jnp.float32)

    kern = functools.partial(_self_attention_kernel, heads=heads,
                             inv_scale=1.0 / math.sqrt(embed_size))

    return pl.pallas_call(
        kern,
        out_shape=jax.ShapeDtypeStruct((N, Lq, E), jnp.float32),
        grid=(N,),
        in_specs=[
            pl.BlockSpec((1, Lv, E), lambda n: (n, 0, 0)),   # values
            pl.BlockSpec((1, Lk, E), lambda n: (n, 0, 0)),   # keys
            pl.BlockSpec((1, Lq, E), lambda n: (n, 0, 0)),   # query
            pl.BlockSpec((1, Lq, Lk), lambda n: (n, 0, 0)),  # mask (per batch)
            pl.BlockSpec((E, E), lambda n: (0, 0)),          # Wv block-diag
            pl.BlockSpec((E, E), lambda n: (0, 0)),          # Wk block-diag
            pl.BlockSpec((E, E), lambda n: (0, 0)),          # Wq block-diag
            pl.BlockSpec((E, E), lambda n: (0, 0)),          # Wfc^T
            pl.BlockSpec((1, E), lambda n: (0, 0)),          # bfc
        ],
        out_specs=pl.BlockSpec((1, Lq, E), lambda n: (n, 0, 0)),
        compiler_params=pltpu.CompilerParams(dimension_semantics=("parallel",)),
    )(values, keys, query, mask3, wv_bd, wk_bd, wq_bd, wo_t, bo)


# ---------------------------- pure-JAX reference (for sanity check) ----------------------------

def self_attention_ref(values, keys, query, mask, params, embed_size, heads):
    N, Lq, E = query.shape
    Lk = keys.shape[1]
    Lv = values.shape[1]
    D = E // heads
    v = values.reshape(N, Lv, heads, D) @ params['Wv'].T
    k = keys.reshape(N, Lk, heads, D) @ params['Wk'].T
    q = query.reshape(N, Lq, heads, D) @ params['Wq'].T
    energy = jnp.einsum('nqhd,nkhd->nhqk', q, k)
    energy = jnp.where(mask[:, None, 0] == 0 if mask.ndim == 4 else mask[:, None] == 0,
                       jnp.float32(-1e20), energy)
    att = jax.nn.softmax(energy / math.sqrt(embed_size), axis=3)
    out = jnp.einsum('nhqk,nkhd->nqhd', att, v).reshape(N, Lq, E)
    return out @ params['Wfc'].T + params['bfc']


# ---------------------------- deterministic parameter init ----------------------------

def init_params(key, embed_size, heads):
    D = embed_size // heads
    k1, k2, k3, k4, k5 = jax.random.split(key, 5)

    def nrm(k, shape, scale=0.1):
        return jax.random.normal(k, shape, jnp.float32) * scale

    return dict(
        Wv=nrm(k1, (D, D)),
        Wk=nrm(k2, (D, D)),
        Wq=nrm(k3, (D, D)),
        Wfc=nrm(k4, (embed_size, embed_size)),
        bfc=nrm(k5, (embed_size,), 0.01),
    )


# ---------------------------- main ----------------------------

if __name__ == "__main__":
    embed_size = 32
    heads = 4
    N, seq_len = 2, 8

    root = jax.random.PRNGKey(0)
    kp, kv, kk, kq = jax.random.split(root, 4)

    params = init_params(kp, embed_size, heads)

    values = jax.random.normal(kv, (N, seq_len, embed_size), jnp.float32)
    keys = jax.random.normal(kk, (N, seq_len, embed_size), jnp.float32)
    query = jax.random.normal(kq, (N, seq_len, embed_size), jnp.float32)

    # Causal mask, shared across heads: (N, 1, Lq, Lk).
    mask = jnp.broadcast_to(
        jnp.tril(jnp.ones((seq_len, seq_len), jnp.float32))[None, None],
        (N, 1, seq_len, seq_len))

    out = self_attention(values, keys, query, mask, params, embed_size, heads)
    out = jax.block_until_ready(out)

    ref = self_attention_ref(values, keys, query, mask, params, embed_size, heads)
    err = float(jnp.max(jnp.abs(out - ref)))

    assert out.shape == (N, seq_len, embed_size)
    assert bool(jnp.all(jnp.isfinite(out)))
    assert err < 5e-2, f"max abs error vs reference: {err}"
    print("KERNEL_OK")
</pallas_src>

<mosaic_0001>
module attributes {stable_mosaic.version = 11 : i64} {
  func.func @_self_attention_kernel(%arg0: i32, %arg1: memref<1x8x32xf32, #tpu.memory_space<vmem>>, %arg2: memref<1x8x32xf32, #tpu.memory_space<vmem>>, %arg3: memref<1x8x32xf32, #tpu.memory_space<vmem>>, %arg4: memref<1x8x8xf32, #tpu.memory_space<vmem>>, %arg5: memref<32x32xf32, #tpu.memory_space<vmem>>, %arg6: memref<32x32xf32, #tpu.memory_space<vmem>>, %arg7: memref<32x32xf32, #tpu.memory_space<vmem>>, %arg8: memref<32x32xf32, #tpu.memory_space<vmem>>, %arg9: memref<1x32xf32, #tpu.memory_space<vmem>>, %arg10: memref<1x8x32xf32, #tpu.memory_space<vmem>>) attributes {dimension_semantics = [#tpu.dimension_semantics<parallel>], iteration_bounds = array<i64: 2>, scalar_prefetch = 0 : i64, scratch_operands = 0 : i64, tpu.core_type = #tpu.core_type<tc>, window_params = [{transform_indices = @transform_0, window_bounds = array<i64: 1, 8, 32>}, {transform_indices = @transform_1, window_bounds = array<i64: 1, 8, 32>}, {transform_indices = @transform_2, window_bounds = array<i64: 1, 8, 32>}, {transform_indices = @transform_3, window_bounds = array<i64: 1, 8, 8>}, {pipeline_mode = #tpu.pipeline_mode<synchronous>, transform_indices = @transform_4, window_bounds = array<i64: 32, 32>}, {pipeline_mode = #tpu.pipeline_mode<synchronous>, transform_indices = @transform_5, window_bounds = array<i64: 32, 32>}, {pipeline_mode = #tpu.pipeline_mode<synchronous>, transform_indices = @transform_6, window_bounds = array<i64: 32, 32>}, {pipeline_mode = #tpu.pipeline_mode<synchronous>, transform_indices = @transform_7, window_bounds = array<i64: 32, 32>}, {pipeline_mode = #tpu.pipeline_mode<synchronous>, transform_indices = @transform_8, window_bounds = array<i64: 1, 32>}, {transform_indices = @transform_9, window_bounds = array<i64: 1, 8, 32>}]} {
    %c0 = arith.constant 0 : index
    %c0_0 = arith.constant 0 : index
    %c0_1 = arith.constant 0 : index
    %0 = vector.load %arg1[%c0, %c0_0, %c0_1] : memref<1x8x32xf32, #tpu.memory_space<vmem>>, vector<1x8x32xf32>
    %1 = vector.shape_cast %0 : vector<1x8x32xf32> to vector<8x32xf32>
    %c0_2 = arith.constant 0 : index
    %c0_3 = arith.constant 0 : index
    %c0_4 = arith.constant 0 : index
    %2 = vector.load %arg2[%c0_2, %c0_3, %c0_4] : memref<1x8x32xf32, #tpu.memory_space<vmem>>, vector<1x8x32xf32>
    %3 = vector.shape_cast %2 : vector<1x8x32xf32> to vector<8x32xf32>
    %c0_5 = arith.constant 0 : index
    %c0_6 = arith.constant 0 : index
    %c0_7 = arith.constant 0 : index
    %4 = vector.load %arg3[%c0_5, %c0_6, %c0_7] : memref<1x8x32xf32, #tpu.memory_space<vmem>>, vector<1x8x32xf32>
    %5 = vector.shape_cast %4 : vector<1x8x32xf32> to vector<8x32xf32>
    %c0_8 = arith.constant 0 : index
    %c0_9 = arith.constant 0 : index
    %c0_10 = arith.constant 0 : index
    %6 = vector.load %arg4[%c0_8, %c0_9, %c0_10] : memref<1x8x8xf32, #tpu.memory_space<vmem>>, vector<1x8x8xf32>
    %7 = vector.shape_cast %6 : vector<1x8x8xf32> to vector<8x8xf32>
    %c0_11 = arith.constant 0 : index
    %c0_12 = arith.constant 0 : index
    %8 = vector.load %arg5[%c0_11, %c0_12] : memref<32x32xf32, #tpu.memory_space<vmem>>, vector<32x32xf32>
    %cst = arith.constant dense<0.000000e+00> : vector<8x32xf32>
    %9 = tpu.matmul %1, %8, %cst {dimension_numbers = #tpu.dot_dimension_numbers<[1], [0], [0], [1], [0, 0, 1, 1], [], []>} : vector<8x32xf32>, vector<32x32xf32>, vector<8x32xf32> -> vector<8x32xf32>
    %c0_13 = arith.constant 0 : index
    %c0_14 = arith.constant 0 : index
    %10 = vector.load %arg6[%c0_13, %c0_14] : memref<32x32xf32, #tpu.memory_space<vmem>>, vector<32x32xf32>
    %cst_15 = arith.constant dense<0.000000e+00> : vector<8x32xf32>
    %11 = tpu.matmul %3, %10, %cst_15 {dimension_numbers = #tpu.dot_dimension_numbers<[1], [0], [0], [1], [0, 0, 1, 1], [], []>} : vector<8x32xf32>, vector<32x32xf32>, vector<8x32xf32> -> vector<8x32xf32>
    %c0_16 = arith.constant 0 : index
    %c0_17 = arith.constant 0 : index
    %12 = vector.load %arg7[%c0_16, %c0_17] : memref<32x32xf32, #tpu.memory_space<vmem>>, vector<32x32xf32>
    %cst_18 = arith.constant dense<0.000000e+00> : vector<8x32xf32>
    %13 = tpu.matmul %5, %12, %cst_18 {dimension_numbers = #tpu.dot_dimension_numbers<[1], [0], [0], [1], [0, 0, 1, 1], [], []>} : vector<8x32xf32>, vector<32x32xf32>, vector<8x32xf32> -> vector<8x32xf32>
    %14 = vector.extract_strided_slice %13 {offsets = [0, 0], sizes = [8, 8], strides = [1, 1]} : vector<8x32xf32> to vector<8x8xf32>
    %15 = vector.extract_strided_slice %11 {offsets = [0, 0], sizes = [8, 8], strides = [1, 1]} : vector<8x32xf32> to vector<8x8xf32>
    %16 = vector.extract_strided_slice %9 {offsets = [0, 0], sizes = [8, 8], strides = [1, 1]} : vector<8x32xf32> to vector<8x8xf32>
    %cst_19 = arith.constant dense<0.000000e+00> : vector<8x8xf32>
    %17 = tpu.matmul %14, %15, %cst_19 {dimension_numbers = #tpu.dot_dimension_numbers<[1], [1], [0], [0], [0, 0, 1, 0], [], []>} : vector<8x8xf32>, vector<8x8xf32>, vector<8x8xf32> -> vector<8x8xf32>
    %cst_20 = arith.constant 0.000000e+00 : f32
    %18 = vector.broadcast %cst_20 : f32 to vector<8x8xf32>
    %19 = arith.cmpf oeq, %7, %18 : vector<8x8xf32>
    %cst_21 = arith.constant -1.000000e+20 : f32
    %20 = vector.broadcast %cst_21 : f32 to vector<8x8xf32>
    %21 = arith.select %19, %20, %17 : vector<8x8xi1>, vector<8x8xf32>
    %cst_22 = arith.constant 0.176776692 : f32
    %22 = vector.broadcast %cst_22 : f32 to vector<8x8xf32>
    %23 = arith.mulf %21, %22 : vector<8x8xf32>
    %cst_23 = arith.constant dense<0xFF800000> : vector<8xf32>
    %24 = vector.multi_reduction <maximumf>, %23, %cst_23 [1] : vector<8x8xf32> to vector<8xf32>
    %25 = vector.shape_cast %24 : vector<8xf32> to vector<8x1xf32>
    %26 = vector.broadcast %25 : vector<8x1xf32> to vector<8x8xf32>
    %27 = arith.subf %23, %26 : vector<8x8xf32>
    %28 = math.exp %27 : vector<8x8xf32>
    %cst_24 = arith.constant dense<0.000000e+00> : vector<8xf32>
    %29 = vector.multi_reduction <add>, %28, %cst_24 [1] : vector<8x8xf32> to vector<8xf32>
    %30 = vector.shape_cast %29 : vector<8xf32> to vector<8x1xf32>
    %31 = tpu.reciprocal %30 {approx = true} : vector<8x1xf32> -> vector<8x1xf32>
    %32 = vector.broadcast %31 : vector<8x1xf32> to vector<8x8xf32>
    %33 = arith.mulf %28, %32 : vector<8x8xf32>
    %cst_25 = arith.constant dense<0.000000e+00> : vector<8x8xf32>
    %34 = tpu.matmul %33, %16, %cst_25 {dimension_numbers = #tpu.dot_dimension_numbers<[1], [0], [0], [1], [0, 0, 1, 1], [], []>} : vector<8x8xf32>, vector<8x8xf32>, vector<8x8xf32> -> vector<8x8xf32>
    %35 = vector.extract_strided_slice %13 {offsets = [0, 8], sizes = [8, 8], strides = [1, 1]} : vector<8x32xf32> to vector<8x8xf32>
    %36 = vector.extract_strided_slice %11 {offsets = [0, 8], sizes = [8, 8], strides = [1, 1]} : vector<8x32xf32> to vector<8x8xf32>
    %37 = vector.extract_strided_slice %9 {offsets = [0, 8], sizes = [8, 8], strides = [1, 1]} : vector<8x32xf32> to vector<8x8xf32>
    %cst_26 = arith.constant dense<0.000000e+00> : vector<8x8xf32>
    %38 = tpu.matmul %35, %36, %cst_26 {dimension_numbers = #tpu.dot_dimension_numbers<[1], [1], [0], [0], [0, 0, 1, 0], [], []>} : vector<8x8xf32>, vector<8x8xf32>, vector<8x8xf32> -> vector<8x8xf32>
    %cst_27 = arith.constant 0.000000e+00 : f32
    %39 = vector.broadcast %cst_27 : f32 to vector<8x8xf32>
    %40 = arith.cmpf oeq, %7, %39 : vector<8x8xf32>
    %cst_28 = arith.constant -1.000000e+20 : f32
    %41 = vector.broadcast %cst_28 : f32 to vector<8x8xf32>
    %42 = arith.select %40, %41, %38 : vector<8x8xi1>, vector<8x8xf32>
    %cst_29 = arith.constant 0.176776692 : f32
    %43 = vector.broadcast %cst_29 : f32 to vector<8x8xf32>
    %44 = arith.mulf %42, %43 : vector<8x8xf32>
    %cst_30 = arith.constant dense<0xFF800000> : vector<8xf32>
    %45 = vector.multi_reduction <maximumf>, %44, %cst_30 [1] : vector<8x8xf32> to vector<8xf32>
    %46 = vector.shape_cast %45 : vector<8xf32> to vector<8x1xf32>
    %47 = vector.broadcast %46 : vector<8x1xf32> to vector<8x8xf32>
    %48 = arith.subf %44, %47 : vector<8x8xf32>
    %49 = math.exp %48 : vector<8x8xf32>
    %cst_31 = arith.constant dense<0.000000e+00> : vector<8xf32>
    %50 = vector.multi_reduction <add>, %49, %cst_31 [1] : vector<8x8xf32> to vector<8xf32>
    %51 = vector.shape_cast %50 : vector<8xf32> to vector<8x1xf32>
    %52 = tpu.reciprocal %51 {approx = true} : vector<8x1xf32> -> vector<8x1xf32>
    %53 = vector.broadcast %52 : vector<8x1xf32> to vector<8x8xf32>
    %54 = arith.mulf %49, %53 : vector<8x8xf32>
    %cst_32 = arith.constant dense<0.000000e+00> : vector<8x8xf32>
    %55 = tpu.matmul %54, %37, %cst_32 {dimension_numbers = #tpu.dot_dimension_numbers<[1], [0], [0], [1], [0, 0, 1, 1], [], []>} : vector<8x8xf32>, vector<8x8xf32>, vector<8x8xf32> -> vector<8x8xf32>
    %56 = vector.extract_strided_slice %13 {offsets = [0, 16], sizes = [8, 8], strides = [1, 1]} : vector<8x32xf32> to vector<8x8xf32>
    %57 = vector.extract_strided_slice %11 {offsets = [0, 16], sizes = [8, 8], strides = [1, 1]} : vector<8x32xf32> to vector<8x8xf32>
    %58 = vector.extract_strided_slice %9 {offsets = [0, 16], sizes = [8, 8], strides = [1, 1]} : vector<8x32xf32> to vector<8x8xf32>
    %cst_33 = arith.constant dense<0.000000e+00> : vector<8x8xf32>
    %59 = tpu.matmul %56, %57, %cst_33 {dimension_numbers = #tpu.dot_dimension_numbers<[1], [1], [0], [0], [0, 0, 1, 0], [], []>} : vector<8x8xf32>, vector<8x8xf32>, vector<8x8xf32> -> vector<8x8xf32>
    %cst_34 = arith.constant 0.000000e+00 : f32
    %60 = vector.broadcast %cst_34 : f32 to vector<8x8xf32>
    %61 = arith.cmpf oeq, %7, %60 : vector<8x8xf32>
    %cst_35 = arith.constant -1.000000e+20 : f32
    %62 = vector.broadcast %cst_35 : f32 to vector<8x8xf32>
    %63 = arith.select %61, %62, %59 : vector<8x8xi1>, vector<8x8xf32>
    %cst_36 = arith.constant 0.176776692 : f32
    %64 = vector.broadcast %cst_36 : f32 to vector<8x8xf32>
    %65 = arith.mulf %63, %64 : vector<8x8xf32>
    %cst_37 = arith.constant dense<0xFF800000> : vector<8xf32>
    %66 = vector.multi_reduction <maximumf>, %65, %cst_37 [1] : vector<8x8xf32> to vector<8xf32>
    %67 = vector.shape_cast %66 : vector<8xf32> to vector<8x1xf32>
    %68 = vector.broadcast %67 : vector<8x1xf32> to vector<8x8xf32>
    %69 = arith.subf %65, %68 : vector<8x8xf32>
    %70 = math.exp %69 : vector<8x8xf32>
    %cst_38 = arith.constant dense<0.000000e+00> : vector<8xf32>
    %71 = vector.multi_reduction <add>, %70, %cst_38 [1] : vector<8x8xf32> to vector<8xf32>
    %72 = vector.shape_cast %71 : vector<8xf32> to vector<8x1xf32>
    %73 = tpu.reciprocal %72 {approx = true} : vector<8x1xf32> -> vector<8x1xf32>
    %74 = vector.broadcast %73 : vector<8x1xf32> to vector<8x8xf32>
    %75 = arith.mulf %70, %74 : vector<8x8xf32>
    %cst_39 = arith.constant dense<0.000000e+00> : vector<8x8xf32>
    %76 = tpu.matmul %75, %58, %cst_39 {dimension_numbers = #tpu.dot_dimension_numbers<[1], [0], [0], [1], [0, 0, 1, 1], [], []>} : vector<8x8xf32>, vector<8x8xf32>, vector<8x8xf32> -> vector<8x8xf32>
    %77 = vector.extract_strided_slice %13 {offsets = [0, 24], sizes = [8, 8], strides = [1, 1]} : vector<8x32xf32> to vector<8x8xf32>
    %78 = vector.extract_strided_slice %11 {offsets = [0, 24], sizes = [8, 8], strides = [1, 1]} : vector<8x32xf32> to vector<8x8xf32>
    %79 = vector.extract_strided_slice %9 {offsets = [0, 24], sizes = [8, 8], strides = [1, 1]} : vector<8x32xf32> to vector<8x8xf32>
    %cst_40 = arith.constant dense<0.000000e+00> : vector<8x8xf32>
    %80 = tpu.matmul %77, %78, %cst_40 {dimension_numbers = #tpu.dot_dimension_numbers<[1], [1], [0], [0], [0, 0, 1, 0], [], []>} : vector<8x8xf32>, vector<8x8xf32>, vector<8x8xf32> -> vector<8x8xf32>
    %cst_41 = arith.constant 0.000000e+00 : f32
    %81 = vector.broadcast %cst_41 : f32 to vector<8x8xf32>
    %82 = arith.cmpf oeq, %7, %81 : vector<8x8xf32>
    %cst_42 = arith.constant -1.000000e+20 : f32
    %83 = vector.broadcast %cst_42 : f32 to vector<8x8xf32>
    %84 = arith.select %82, %83, %80 : vector<8x8xi1>, vector<8x8xf32>
    %cst_43 = arith.constant 0.176776692 : f32
    %85 = vector.broadcast %cst_43 : f32 to vector<8x8xf32>
    %86 = arith.mulf %84, %85 : vector<8x8xf32>
    %cst_44 = arith.constant dense<0xFF800000> : vector<8xf32>
    %87 = vector.multi_reduction <maximumf>, %86, %cst_44 [1] : vector<8x8xf32> to vector<8xf32>
    %88 = vector.shape_cast %87 : vector<8xf32> to vector<8x1xf32>
    %89 = vector.broadcast %88 : vector<8x1xf32> to vector<8x8xf32>
    %90 = arith.subf %86, %89 : vector<8x8xf32>
    %91 = math.exp %90 : vector<8x8xf32>
    %cst_45 = arith.constant dense<0.000000e+00> : vector<8xf32>
    %92 = vector.multi_reduction <add>, %91, %cst_45 [1] : vector<8x8xf32> to vector<8xf32>
    %93 = vector.shape_cast %92 : vector<8xf32> to vector<8x1xf32>
    %94 = tpu.reciprocal %93 {approx = true} : vector<8x1xf32> -> vector<8x1xf32>
    %95 = vector.broadcast %94 : vector<8x1xf32> to vector<8x8xf32>
    %96 = arith.mulf %91, %95 : vector<8x8xf32>
    %cst_46 = arith.constant dense<0.000000e+00> : vector<8x8xf32>
    %97 = tpu.matmul %96, %79, %cst_46 {dimension_numbers = #tpu.dot_dimension_numbers<[1], [0], [0], [1], [0, 0, 1, 1], [], []>} : vector<8x8xf32>, vector<8x8xf32>, vector<8x8xf32> -> vector<8x8xf32>
    %98 = tpu.concatenate %34, %55, %76, %97 in 1 : vector<8x8xf32>, vector<8x8xf32>, vector<8x8xf32>, vector<8x8xf32> -> vector<8x32xf32>
    %c0_47 = arith.constant 0 : index
    %c0_48 = arith.constant 0 : index
    %99 = vector.load %arg8[%c0_47, %c0_48] : memref<32x32xf32, #tpu.memory_space<vmem>>, vector<32x32xf32>
    %cst_49 = arith.constant dense<0.000000e+00> : vector<8x32xf32>
    %100 = tpu.matmul %98, %99, %cst_49 {dimension_numbers = #tpu.dot_dimension_numbers<[1], [0], [0], [1], [0, 0, 1, 1], [], []>} : vector<8x32xf32>, vector<32x32xf32>, vector<8x32xf32> -> vector<8x32xf32>
    %c0_50 = arith.constant 0 : index
    %c0_51 = arith.constant 0 : index
    %101 = vector.load %arg9[%c0_50, %c0_51] : memref<1x32xf32, #tpu.memory_space<vmem>>, vector<1x32xf32>
    %102 = vector.broadcast %101 : vector<1x32xf32> to vector<8x32xf32>
    %103 = arith.addf %100, %102 : vector<8x32xf32>
    %c0_52 = arith.constant 0 : index
    %c0_53 = arith.constant 0 : index
    %c0_54 = arith.constant 0 : index
    %104 = vector.load %arg10[%c0_52, %c0_53, %c0_54] : memref<1x8x32xf32, #tpu.memory_space<vmem>>, vector<1x8x32xf32>
    %105 = vector.shape_cast %104 : vector<1x8x32xf32> to vector<8x32xf32>
    %106 = vector.shape_cast %103 : vector<8x32xf32> to vector<1x8x32xf32>
    tpu.vector_store %arg10[%c0_52, %c0_53, %c0_54], %106 {strides = array<i32>} : memref<1x8x32xf32, #tpu.memory_space<vmem>>, vector<1x8x32xf32>,
    return
  }
  func.func @transform_0(%arg0: i32) -> (i32, i32, i32) {
    %c0_i32 = arith.constant 0 : i32
    %c0_i32_0 = arith.constant 0 : i32
    %c0_i32_1 = arith.constant 0 : i32
    return %arg0, %c0_i32, %c0_i32_0 : i32, i32, i32
  }
  func.func @transform_1(%arg0: i32) -> (i32, i32, i32) {
    %c0_i32 = arith.constant 0 : i32
    %c0_i32_0 = arith.constant 0 : i32
    %c0_i32_1 = arith.constant 0 : i32
    return %arg0, %c0_i32, %c0_i32_0 : i32, i32, i32
  }
  func.func @transform_2(%arg0: i32) -> (i32, i32, i32) {
    %c0_i32 = arith.constant 0 : i32
    %c0_i32_0 = arith.constant 0 : i32
    %c0_i32_1 = arith.constant 0 : i32
    return %arg0, %c0_i32, %c0_i32_0 : i32, i32, i32
  }
  func.func @transform_3(%arg0: i32) -> (i32, i32, i32) {
    %c0_i32 = arith.constant 0 : i32
    %c0_i32_0 = arith.constant 0 : i32
    %c0_i32_1 = arith.constant 0 : i32
    return %arg0, %c0_i32, %c0_i32_0 : i32, i32, i32
  }
  func.func @transform_4(%arg0: i32) -> (i32, i32) {
    %c0_i32 = arith.constant 0 : i32
    %c0_i32_0 = arith.constant 0 : i32
    %c0_i32_1 = arith.constant 0 : i32
    return %c0_i32, %c0_i32_0 : i32, i32
  }
  func.func @transform_5(%arg0: i32) -> (i32, i32) {
    %c0_i32 = arith.constant 0 : i32
    %c0_i32_0 = arith.constant 0 : i32
    %c0_i32_1 = arith.constant 0 : i32
    return %c0_i32, %c0_i32_0 : i32, i32
  }
  func.func @transform_6(%arg0: i32) -> (i32, i32) {
    %c0_i32 = arith.constant 0 : i32
    %c0_i32_0 = arith.constant 0 : i32
    %c0_i32_1 = arith.constant 0 : i32
    return %c0_i32, %c0_i32_0 : i32, i32
  }
  func.func @transform_7(%arg0: i32) -> (i32, i32) {
    %c0_i32 = arith.constant 0 : i32
    %c0_i32_0 = arith.constant 0 : i32
    %c0_i32_1 = arith.constant 0 : i32
    return %c0_i32, %c0_i32_0 : i32, i32
  }
  func.func @transform_8(%arg0: i32) -> (i32, i32) {
    %c0_i32 = arith.constant 0 : i32
    %c0_i32_0 = arith.constant 0 : i32
    %c0_i32_1 = arith.constant 0 : i32
    return %c0_i32, %c0_i32_0 : i32, i32
  }
  func.func @transform_9(%arg0: i32) -> (i32, i32, i32) {
    %c0_i32 = arith.constant 0 : i32
    %c0_i32_0 = arith.constant 0 : i32
    %c0_i32_1 = arith.constant 0 : i32
    return %arg0, %c0_i32, %c0_i32_0 : i32, i32, i32
  }
}

</mosaic_0001>

<bundles_post_ra>
// kernel: tpu_custom_call.1
= control target key start
LH: loop header
LB: loop body
LE: loop exit
PB: predicated region body
PF: predicated region fallthrough
CT: control target
= control target key end

     0   :  { %s2914_s0 = inlined_call_operand.hbm [shape: f32[2,8,32], index: 0, kind: input, shape index: {}]   ;;  %s2915_s1 = inlined_call_operand.hbm [shape: f32[2,8,32], index: 1, kind: input, shape index: {}]   ;;  %s2916_s2 = inlined_call_operand.hbm [shape: f32[2,8,32], index: 2, kind: input, shape index: {}]   ;;  %s2917_s3 = inlined_call_operand.hbm [shape: f32[2,8,8], index: 3, kind: input, shape index: {}]   ;;  %s2918_s4 = inlined_call_operand.hbm [shape: f32[32,32], index: 4, kind: input, shape index: {}]   ;;  %s2919_s5 = inlined_call_operand.hbm [shape: f32[32,32], index: 5, kind: input, shape index: {}]   ;;  %s2920_s6 = inlined_call_operand.hbm [shape: f32[32,32], index: 6, kind: input, shape index: {}]   ;;  %s2921_s7 = inlined_call_operand.hbm [shape: f32[32,32], index: 7, kind: input, shape index: {}]   ;;  %s2922_s8 = inlined_call_operand.vmem [shape: f32[1,32], index: 8, kind: input, shape index: {}]   ;;  %s2923_s9 = inlined_call_operand.hbm [shape: f32[2,8,32], index: 9, kind: output, shape index: {}]  }
   0x1   :  { %2949 = sst [smem:[#allocation29_spill]] %s2915_s1 }
   0x2   :  { %2950 = sst [smem:[#allocation30_spill]] %s2918_s4 }
   0x3   :  { %2951 = sst [smem:[#allocation31_spill]] %s2919_s5 }
   0x4   :  { %2952 = sst [smem:[#allocation32_spill]] %s2922_s8 }
   0x5   :  { %2953 = sst [smem:[#allocation33_spill]] %s2923_s9 }
   0x6   :  { %14 = vsyncpa [#allocation3], 0 }
   0x7   :  { %16 = vsyncpa [#allocation3 + $0x1], 0 }
   0x8   :  { %17 = vsyncpa [#allocation6], 0 }
   0x9   :  { %19 = vsyncpa [#allocation6 + $0x1], 0 }
   0xa   :  { %20 = vsyncpa [#allocation9], 0 }
   0xb   :  { %22 = vsyncpa [#allocation9 + $0x1], 0 }
   0xc   :  { %23 = vsyncpa [#allocation12], 0 }
   0xd   :  { %24 = vsyncpa [#allocation15], 0 }
   0xe   :  { %25 = vsyncpa [#allocation4], 0 }
   0xf   :  { %27 = vsyncpa [#allocation4 + $0x1], 0  ;;  %s2415_s30 = smov 0   ;;  %s2417_s10 = smov 0  }
  0x10   :  { %s2419_s11 = smov 0   ;;  %s2421_s12 = smov 0  }
  0x11 LB: > { %2954 = sst [smem:[#allocation24_spill]] %s2331_s30  ;;  %s2436_s13 = sadd.s32 4294967295, %s2343_s12   ;;  %s2343_s12 = sphi %s2421_s12, %s2997_s12   ;;  %s2339_s11 = sphi %s2419_s11, %s3001_s11   ;;  %s2335_s10 = sphi %s2417_s10, %s3000_s10   ;;  %s2331_s30 = sphi %s2415_s30, %s2999_s30  }
  0x12   : > { %s1706_s14 = sadd.s32 4294967294, %s2343_s12   ;;  %p53_p0 = scmp.ne.s32.totalorder %s2335_s10, %s2331_s30 }
  0x13   : > { %p2924_p1 = scmp.eq.s32.totalorder %s2436_s13, 0  ;;  %p266_p3 = scmp.eq.s32.totalorder %s1706_s14, 1 }
  0x14   : > { %p1707_p5 = scmp.ge.s32.totalorder %s2343_s12, 1  ;;  %p273_p7 = scmp.lt.s32.totalorder %s2343_s12, 3 }
  0x15   : > { %p2445_p4 = por %p2924_p1, %p53_p0  ;;  %p2450_p6 = por %p266_p3, %p53_p0 }
  0x16   : > { %p2455_p8 = pnand %p1707_p5, %p273_p7  ;;  %s2345_s18 = smov [#allocation10]  }
  0x17   : > { %s2955_s15 = scalar_select %p2445_p4, 1, 0 }
  0x18   : > { %s2956_s16 = scalar_select %p2450_p6, 1, 0 }
  0x19   : > { %s2958_s17 = scalar_select %p2455_p8, 1, 0 }
  0x1a   : > { %2957 = sst [smem:[#allocation25_spill]] %s2956_s16  ;;  %s285_s19 = sshll.u32 %s2345_s18, 4  ;;  %s2459_s19 = int_to_ptr.vmem [resolvable:$true] %s285_s19 }
  0x1b   : > { %p1922_p9 = pneg %p2455_p8  ;;  %s2346_s21 = smov [#allocation11]  }
  0x1c   : > { %s298_s22 = sshll.u32 %s2346_s21, 4  ;;  %s2960_s4 = sld [smem:[#allocation30_spill]]  ;;  %s2470_s22 = int_to_ptr.vmem [resolvable:$true] %s298_s22 }
  0x1d   : > { %p2466_p11 = pnand %p1922_p9, %p2924_p1 }
  0x1f   : > { %s2959_s20 = scalar_select %p2466_p11, 1, 0 }
  0x20   : > { %p2480_p13 = pneg %p2466_p11 }
  0x22   : > { %s2025_s25 = scalar_lea.hbm %s2960_s4, 512 }
  0x23   : > { %p2026_p12 = scmp.ne.s32.totalorder %s2960_s4, %s2025_s25  ;;  %p2032_p5 = scmp.lt.u32.totalorder %s2025_s25, %s2960_s4 }
  0x24   : > { %s2961_s28 = scalar_select %p2480_p13, 1, 0 }
  0x25   : > { %p2028_p0 = pnand %p2480_p13, %p2026_p12 }
  0x27   : > { %p2029_p3 = pneg %p2028_p0 }
  0x29   : > { %p2034_p7 = pnand %p2032_p5, %p2029_p3 }
  0x2b   : > { %2037 = shalt.err (!%p2034_p7)
}
  0x2c   : > { %s2038_s18 = scalar_lea.vmem %s2459_s19, 512  ;;  %p2046_p2 = scmp.lt.s32.totalorder %s2459_s19, %s2459_s19 }
  0x2d   : > { %p2039_p9 = scmp.ne.s32.totalorder %s2459_s19, %s2038_s18  ;;  %p2047_p6 = scmp.lt.s32.totalorder %s2038_s18, %s2038_s18 }
  0x2f   : > { %p2041_p10 = pnand %p2039_p9, %p2480_p13  ;;  %p2048_p12 = por %p2047_p6, %p2046_p2 }
  0x31   : > { %p2042_p1 = pneg %p2041_p10 }
  0x33   : > { %p2049_p0 = pnand %p2048_p12, %p2042_p1 }
  0x35   : > { %2052 = shalt.err (!%p2049_p0)
}
  0x36   : > { %s2928_s21 = smov 128   ;;  %s2930_s23 = smov 8  }
  0x37   : > { %1925 = dma.hbm_to_vmem [thread:$0]  (!%p2466_p11), %s2960_s4, 512, %s2459_s19, [#allocation9], %s2928_s21, %s2928_s21, %s2930_s23  }
  0x38   : > { %s2962_s5 = sld [smem:[#allocation31_spill]] }
  0x3e   : > { %s2053_s29 = scalar_lea.hbm %s2962_s5, 512 }
  0x3f   : > { %p2054_p1 = scmp.ne.s32.totalorder %s2962_s5, %s2053_s29  ;;  %p2060_p10 = scmp.lt.u32.totalorder %s2053_s29, %s2962_s5 }
  0x41   : > { %p2056_p2 = pnand %p2054_p1, %p2480_p13 }
  0x43   : > { %p2057_p6 = pneg %p2056_p2 }
  0x45   : > { %p2062_p3 = pnand %p2060_p10, %p2057_p6 }
  0x47   : > { %2065 = shalt.err (!%p2062_p3)
}
  0x48   : > { %s2066_s19 = scalar_lea.vmem %s2470_s22, 512  ;;  %p2074_p12 = scmp.lt.s32.totalorder %s2470_s22, %s2470_s22 }
  0x49   : > { %p2067_p5 = scmp.ne.s32.totalorder %s2470_s22, %s2066_s19  ;;  %p2075_p0 = scmp.lt.s32.totalorder %s2066_s19, %s2066_s19 }
  0x4b   : > { %p2069_p7 = pnand %p2067_p5, %p2480_p13  ;;  %p2076_p1 = por %p2075_p0, %p2074_p12 }
  0x4d   : > { %p2070_p9 = pneg %p2069_p7 }
  0x4f   : > { %p2077_p2 = pnand %p2076_p1, %p2070_p9 }
  0x51   : > { %2080 = shalt.err (!%p2077_p2)
}
  0x52   : > { %1928 = dma.hbm_to_vmem [thread:$0]  (!%p2466_p11), %s2962_s5, 512, %s2470_s22, [#allocation12], %s2928_s21, %s2928_s21, %s2930_s23  }
  0x53   : > { %s2531_s24 = sadd.s32 1, %s2343_s12   ;;  %s40_s25 = sadd.s32 1, %s2339_s11 }
  0x54   : > { %2963 = sst [smem:[#allocation26_spill]] %s2531_s24  ;;  %s37_s26 = ssub.s32 %s2343_s12, %s2531_s24 }
  0x55   : > { %p47_p6 = scmp.ne.s32.totalorder %s2339_s11, %s2335_s10  ;;  %p38_p10 = scmp.eq.s32.totalorder %s37_s26, 0 }
  0x56   : > { %p48_p3 = scmp.eq.s32.totalorder %s2343_s12, 0  ;;  %p2964_p5 = scmp.eq.s32.totalorder %s2436_s13, 1 }
  0x57   : > { %p1956_p9 = scmp.lt.s32.totalorder %s2343_s12, 2  ;;  %s2927_s14 = sand.u32 1, %s2339_s11  }
  0x58   : > { %p2541_p7 = por %p2964_p5, %p47_p6  ;;  %p49_p12 = por %p48_p3, %p47_p6 }
  0x59   : > { %s2547_s29 = scalar_select %p38_p10, %s2339_s11, %s40_s25  }
  0x5a   : > { %s2965_s27 = scalar_select %p2541_p7, 1, 0 }
  0x5b   : > { %2967 = sst [smem:[#allocation28_spill]] %s2547_s29  ;;  %s2552_s22 = sshll.u32 %s2927_s14, 3 }
  0x5c   : > { %2966 = sst [smem:[#allocation27_spill]] %s2965_s27  ;;  %s2555_s18 = sshll.u32 %s2343_s12, 7 }
  0x5d   : > { %p2557_p0 = pnand %p1956_p9, %p49_p12  ;;  %s2936_s30 = sand.u32 1, %s2343_s12  }
  0x5e   : > { %s2969_s1 = sld [smem:[#allocation29_spill]]  ;;  %s363_s14 = scalar_lea.vmem [#allocation5], %s2552_s22 }
  0x5f   : > { %s2968_s19 = scalar_select %p2557_p0, 1, 0 }
  0x60   : > { %s370_s21 = sshll.u32 %s363_s14, 4  ;;  %s2573_s23 = scalar_lea.sflag [#allocation6], %s2936_s30  ;;  %s2569_s21 = int_to_ptr.vmem [resolvable:$true] %s370_s21 }
  0x61   : > { %p2579_p2 = pneg %p2557_p0 }
  0x63   : > { %s2970_s5 = scalar_select %p2579_p2, 1, 0 }
  0x64   : > { %s2566_s25 = scalar_lea.hbm %s2969_s1, %s2555_s18  ;;  %s2086_s14 = scalar_lea.hbm %s2969_s1, 256 }
  0x65   : > { %s2081_s4 = scalar_lea.hbm %s2566_s25, 128  ;;  %p2087_p3 = scmp.lt.u32.totalorder %s2566_s25, %s2969_s1 }
  0x66   : > { %p2082_p1 = scmp.ne.s32.totalorder %s2566_s25, %s2081_s4  ;;  %p2088_p5 = scmp.lt.u32.totalorder %s2086_s14, %s2081_s4 }
  0x67   : > { %p2090_p12 = scmp.lt.u32.totalorder %s2081_s4, %s2566_s25 }
  0x68   : > { %p2084_p6 = pnand %p2579_p2, %p2082_p1  ;;  %p2089_p9 = por %p2088_p5, %p2087_p3 }
  0x6a   : > { %p2085_p10 = pneg %p2084_p6  ;;  %p2091_p7 = por %p2090_p12, %p2089_p9 }
  0x6c   : > { %p2092_p4 = pnand %p2091_p7, %p2085_p10 }
  0x6e   : > { %2095 = shalt.err (!%p2092_p4)
}
  0x6f   : > { %s2096_s30 = scalar_lea.vmem %s2569_s21, 128  ;;  %s2349_s16 = smov [#allocation5]  }
  0x70   : > { %p2097_p1 = scmp.ne.s32.totalorder %s2569_s21, %s2096_s30  ;;  %s2101_s26 = sshll.u32 %s2349_s16, 4  ;;  %s2102_s26 = int_to_ptr.vmem [resolvable:$false] %s2101_s26 }
  0x71   : > { %s2103_s24 = scalar_lea.vmem %s2102_s26, 256  ;;  %p2104_p11 = scmp.lt.s32.totalorder %s2569_s21, %s2102_s26 }
  0x72   : > { %p2099_p6 = pnand %p2097_p1, %p2579_p2  ;;  %p2105_p13 = scmp.lt.s32.totalorder %s2103_s24, %s2096_s30 }
  0x74   : > { %p2100_p8 = pneg %p2099_p6  ;;  %p2106_p3 = por %p2105_p13, %p2104_p11 }
  0x76   : > { %p2107_p5 = pnand %p2106_p3, %p2100_p8 }
  0x78   : > { %2110 = shalt.err (!%p2107_p5)
}
  0x79   : > { %1941 = dma.hbm_to_vmem [thread:$0]  (!%p2557_p0), %s2566_s25, 128, %s2569_s21, %s2573_s23  }
  0x7a   : > { %s2350_s4 = smov [#allocation13]   ;;  %s2351_s14 = smov [#allocation14]  }
  0x7b   : > { %s311_s29 = sshll.u32 %s2350_s4, 4  ;;  %s324_s1 = sshll.u32 %s2351_s14, 4  ;;  %s312_s29 = int_to_ptr.vmem [resolvable:$true] %s311_s29  ;;  %s325_s1 = int_to_ptr.vmem [resolvable:$true] %s324_s1 }
  0x7c   : > { %s2111_s26 = scalar_lea.hbm %s2920_s6, 512  ;;  %p2971_p8 = scmp.ne.s32.totalorder %s2961_s28, 0 }
  0x7d   : > { %p2112_p4 = scmp.ne.s32.totalorder %s2920_s6, %s2111_s26  ;;  %p2118_p7 = scmp.lt.u32.totalorder %s2111_s26, %s2920_s6 }
  0x7f   : > { %p2114_p11 = pnand %p2112_p4, %p2971_p8 }
  0x81   : > { %p2115_p13 = pneg %p2114_p11 }
  0x83   : > { %p2120_p10 = pnand %p2118_p7, %p2115_p13 }
  0x85   : > { %2123 = shalt.err (!%p2120_p10)
}
  0x86   : > { %s2124_s21 = scalar_lea.vmem %s312_s29, 512  ;;  %p2132_p6 = scmp.lt.s32.totalorder %s312_s29, %s312_s29 }
  0x87   : > { %p2125_p9 = scmp.ne.s32.totalorder %s312_s29, %s2124_s21  ;;  %p2133_p3 = scmp.lt.s32.totalorder %s2124_s21, %s2124_s21 }
  0x89   : > { %p2127_p12 = pnand %p2125_p9, %p2971_p8  ;;  %p2134_p5 = por %p2133_p3, %p2132_p6 }
  0x8b   : > { %p2128_p1 = pneg %p2127_p12 }
  0x8d   : > { %p2135_p0 = pnand %p2134_p5, %p2128_p1 }
  0x8f   : > { %2138 = shalt.err (!%p2135_p0)
}
  0x90   : > { %p2972_p4 = scmp.ne.s32.totalorder %s2959_s20, 0  ;;  %s2973_s9 = smov 8  }
  0x91   : > { %s2974_s25 = smov 128   ;;  %s2139_s16 = scalar_lea.hbm %s2921_s7, 512 }
  0x92   : > { %1931 = dma.hbm_to_vmem [thread:$0]  (!%p2972_p4), %s2920_s6, 512, %s312_s29, [#allocation12], %s2974_s25, %s2974_s25, %s2973_s9  }
  0x93   : > { %p2140_p11 = scmp.ne.s32.totalorder %s2921_s7, %s2139_s16  ;;  %p2146_p7 = scmp.lt.u32.totalorder %s2139_s16, %s2921_s7 }
  0x95   : > { %p2142_p0 = pnand %p2140_p11, %p2971_p8 }
  0x97   : > { %p2143_p13 = pneg %p2142_p0 }
  0x99   : > { %p2148_p10 = pnand %p2146_p7, %p2143_p13 }
  0x9b   : > { %2151 = shalt.err (!%p2148_p10)
}
  0x9c   : > { %s2152_s8 = scalar_lea.vmem %s325_s1, 512  ;;  %p2160_p6 = scmp.lt.s32.totalorder %s325_s1, %s325_s1 }
  0x9d   : > { %p2153_p9 = scmp.ne.s32.totalorder %s325_s1, %s2152_s8  ;;  %p2161_p3 = scmp.lt.s32.totalorder %s2152_s8, %s2152_s8 }
  0x9f   : > { %p2155_p12 = pnand %p2153_p9, %p2971_p8  ;;  %p2162_p5 = por %p2161_p3, %p2160_p6 }
  0xa1   : > { %p2156_p1 = pneg %p2155_p12 }
  0xa3   : > { %p2163_p2 = pnand %p2162_p5, %p2156_p1 }
  0xa5   : > { %2166 = shalt.err (!%p2163_p2)
}
  0xa6   : > { %1934 = dma.hbm_to_vmem [thread:$0]  (!%p2972_p4), %s2921_s7, 512, %s325_s1, [#allocation15], %s2974_s25, %s2974_s25, %s2973_s9  }
  0xa7   : > { %s2649_s14 = scalar_lea.hbm %s2914_s0, %s2555_s18  ;;  %s345_s20 = scalar_lea.vmem [#allocation2], %s2552_s22 }
  0xa8   : > { %s352_s16 = sshll.u32 %s345_s20, 4  ;;  %s2658_s24 = scalar_lea.hbm %s2916_s2, %s2555_s18  ;;  %s2652_s16 = int_to_ptr.vmem [resolvable:$true] %s352_s16 }
  0xa9   : > { %s2975_s21 = sand.u32 1, %s2339_s11   ;;  %s2167_s9 = scalar_lea.hbm %s2649_s14, 128 }
  0xaa   : > { %s342_s1 = scalar_lea.sflag [#allocation3], %s2975_s21  ;;  %p2168_p2 = scmp.ne.s32.totalorder %s2649_s14, %s2167_s9 }
  0xab   : > { %p2976_p8 = scmp.ne.s32.totalorder %s2970_s5, 0  ;;  %s2172_s29 = scalar_lea.hbm %s2914_s0, 256 }
  0xac   : > { %p2173_p0 = scmp.lt.u32.totalorder %s2649_s14, %s2914_s0  ;;  %p2174_p13 = scmp.lt.u32.totalorder %s2172_s29, %s2167_s9 }
  0xad   : > { %p2170_p4 = pnand %p2168_p2, %p2976_p8  ;;  %p2176_p10 = scmp.lt.u32.totalorder %s2167_s9, %s2649_s14 }
  0xae   : > { %p2175_p7 = por %p2174_p13, %p2173_p0 }
  0xaf   : > { %p2171_p11 = pneg %p2170_p4 }
  0xb0   : > { %p2177_p9 = por %p2176_p10, %p2175_p7 }
  0xb2   : > { %p2178_p12 = pnand %p2177_p9, %p2171_p11 }
  0xb4   : > { %2181 = shalt.err (!%p2178_p12)
}
  0xb5   : > { %s2182_s4 = scalar_lea.vmem %s2652_s16, 128  ;;  %s2352_s20 = smov [#allocation2]  }
  0xb6   : > { %p2183_p1 = scmp.ne.s32.totalorder %s2652_s16, %s2182_s4  ;;  %s2187_s26 = sshll.u32 %s2352_s20, 4  ;;  %s2188_s26 = int_to_ptr.vmem [resolvable:$false] %s2187_s26 }
  0xb7   : > { %s2189_s30 = scalar_lea.vmem %s2188_s26, 256  ;;  %p2190_p5 = scmp.lt.s32.totalorder %s2652_s16, %s2188_s26 }
  0xb8   : > { %p2185_p6 = pnand %p2183_p1, %p2976_p8  ;;  %p2191_p2 = scmp.lt.s32.totalorder %s2189_s30, %s2182_s4 }
  0xba   : > { %p2186_p3 = pneg %p2185_p6  ;;  %p2192_p4 = por %p2191_p2, %p2190_p5 }
  0xbc   : > { %p2193_p0 = pnand %p2192_p4, %p2186_p3 }
  0xbe   : > { %2196 = shalt.err (!%p2193_p0)
}
  0xbf   : > { %p2977_p11 = scmp.ne.s32.totalorder %s2968_s19, 0  ;;  %s381_s21 = scalar_lea.vmem [#allocation7], %s2552_s22 }
  0xc0   : > { %s388_s9 = sshll.u32 %s381_s21, 4  ;;  %s2688_s29 = scalar_lea.hbm %s2917_s3, %s2555_s18  ;;  %s389_s9 = int_to_ptr.vmem [resolvable:$true] %s388_s9 }
  0xc1   : > { %1938 = dma.hbm_to_vmem [thread:$0]  (!%p2977_p11), %s2649_s14, 128, %s2652_s16, %s342_s1  }
  0xc2   : > { %s2197_s27 = scalar_lea.hbm %s2658_s24, 128  ;;  %s2202_s20 = scalar_lea.hbm %s2916_s2, 256 }
  0xc3   : > { %p2198_p13 = scmp.ne.s32.totalorder %s2658_s24, %s2197_s27  ;;  %p2203_p9 = scmp.lt.u32.totalorder %s2658_s24, %s2916_s2 }
  0xc4   : > { %p2204_p12 = scmp.lt.u32.totalorder %s2202_s20, %s2197_s27  ;;  %p2206_p6 = scmp.lt.u32.totalorder %s2197_s27, %s2658_s24 }
  0xc5   : > { %p2200_p7 = pnand %p2198_p13, %p2976_p8 }
  0xc6   : > { %p2205_p1 = por %p2204_p12, %p2203_p9 }
  0xc7   : > { %p2201_p10 = pneg %p2200_p7 }
  0xc8   : > { %p2207_p3 = por %p2206_p6, %p2205_p1 }
  0xca   : > { %p2208_p5 = pnand %p2207_p3, %p2201_p10 }
  0xcc   : > { %2211 = shalt.err (!%p2208_p5)
}
  0xcd   : > { %s2212_s18 = scalar_lea.vmem %s389_s9, 128  ;;  %s2353_s14 = smov [#allocation7]  }
  0xce   : > { %p2213_p2 = scmp.ne.s32.totalorder %s389_s9, %s2212_s18  ;;  %s2217_s16 = sshll.u32 %s2353_s14, 4  ;;  %s2218_s16 = int_to_ptr.vmem [resolvable:$false] %s2217_s16 }
  0xcf   : > { %s2219_s1 = scalar_lea.vmem %s2218_s16, 256  ;;  %p2220_p13 = scmp.lt.s32.totalorder %s389_s9, %s2218_s16 }
  0xd0   : > { %p2215_p4 = pnand %p2213_p2, %p2976_p8  ;;  %p2221_p7 = scmp.lt.s32.totalorder %s2219_s1, %s2212_s18 }
  0xd2   : > { %p2216_p0 = pneg %p2215_p4  ;;  %p2222_p11 = por %p2221_p7, %p2220_p13 }
  0xd4   : > { %p2223_p9 = pnand %p2222_p11, %p2216_p0 }
  0xd6   : > { %2226 = shalt.err (!%p2223_p9)
}
  0xd7   : > { %p2978_p12 = scmp.ne.s32.totalorder %s2968_s19, 0  ;;  %s399_s21 = scalar_lea.vmem [#allocation8], %s2552_s22 }
  0xd8   : > { %s406_s25 = sshll.u32 %s399_s21, 4  ;;  %s2979_s8 = sand.u32 1, %s2343_s12   ;;  %s407_s25 = int_to_ptr.vmem [resolvable:$true] %s406_s25 }
  0xd9   : > { %1944 = dma.hbm_to_vmem [thread:$0]  (!%p2978_p12), %s2658_s24, 128, %s389_s9, %s2573_s23  }
  0xda   : > { %s396_s27 = scalar_lea.sflag [#allocation9], %s2979_s8  ;;  %s2227_s28 = scalar_lea.hbm %s2688_s29, 128 }
  0xdb   : > { %p2228_p11 = scmp.ne.s32.totalorder %s2688_s29, %s2227_s28  ;;  %s2232_s26 = scalar_lea.hbm %s2917_s3, 256 }
  0xdc   : > { %p2233_p6 = scmp.lt.u32.totalorder %s2688_s29, %s2917_s3  ;;  %p2234_p3 = scmp.lt.u32.totalorder %s2232_s26, %s2227_s28 }
  0xdd   : > { %p2230_p10 = pnand %p2228_p11, %p2976_p8  ;;  %p2236_p2 = scmp.lt.u32.totalorder %s2227_s28, %s2688_s29 }
  0xde   : > { %p2235_p5 = por %p2234_p3, %p2233_p6 }
  0xdf   : > { %p2231_p1 = pneg %p2230_p10 }
  0xe0   : > { %p2237_p4 = por %p2236_p2, %p2235_p5 }
  0xe2   : > { %p2238_p0 = pnand %p2237_p4, %p2231_p1 }
  0xe4   : > { %2241 = shalt.err (!%p2238_p0)
}
  0xe5   : > { %s2242_s23 = scalar_lea.vmem %s407_s25, 128  ;;  %s2354_s22 = smov [#allocation8]  }
  0xe6   : > { %p2243_p13 = scmp.ne.s32.totalorder %s407_s25, %s2242_s23  ;;  %s2247_s24 = sshll.u32 %s2354_s22, 4  ;;  %s2248_s24 = int_to_ptr.vmem [resolvable:$false] %s2247_s24 }
  0xe7   : > { %s2249_s9 = scalar_lea.vmem %s2248_s24, 256  ;;  %p2250_p11 = scmp.lt.s32.totalorder %s407_s25, %s2248_s24 }
  0xe8   : > { %p2245_p7 = pnand %p2243_p13, %p2976_p8  ;;  %p2251_p10 = scmp.lt.s32.totalorder %s2249_s9, %s2242_s23 }
  0xea   : > { %p2246_p9 = pneg %p2245_p7  ;;  %p2252_p12 = por %p2251_p10, %p2250_p11 }
  0xec   : > { %p2253_p3 = pnand %p2252_p12, %p2246_p9 }
  0xee   : > { %2256 = shalt.err (!%p2253_p3)
}
  0xef   : > { %p2980_p6 = scmp.ne.s32.totalorder %s2968_s19, 0  ;;  %p2981_p1 = scmp.ne.s32.totalorder %s2958_s17, 0 }
  0xf0   : > { %s2731_s5 = sand.u32 (!%p2981_p1), 1, %s2335_s10   ;;  %p2982_p8 = scmp.ne.s32.totalorder (!%p2981_p1), %s2955_s15, 0 }
  0xf1   : > { %1947 = dma.hbm_to_vmem [thread:$0]  (!%p2980_p6), %s2688_s29, 128, %s407_s25, %s396_s27  }
  0xf2   : > { %415 = sbr.rel (%p2981_p1) target bundleno = 2179 (0x883), region = 56  ;;  %s2734_s14 = sshll.u32 (!%p2981_p1), %s2731_s5, 3 }
  0xf3   : > { %s418_s16 = scalar_lea.sflag (!%p2981_p1), [#allocation3], %s2731_s5  ;;  %s421_s1 = scalar_lea.vmem (!%p2981_p1), [#allocation2], %s2734_s14 }
  0xf9   : > { %2302 = dma.done.wait (%p2982_p8), %s418_s16, 128  }
  0xfa   : > { %2304 = vsyncadd (%p2982_p8), %s418_s16, 4294967168  ;;  %s426_s17 = sand.u32 1, %s2436_s13   ;;  %s430_s29 = scalar_lea.vmem [#allocation5], %s2734_s14 }
  0xfb   : > { %s427_s19 = scalar_lea.sflag [#allocation6], %s426_s17 }
  0xfc   : > { %2306 = dma.done.wait (%p2982_p8), %s427_s19, 256  }
  0xfd   : > { %2308 = vsyncadd (%p2982_p8), %s427_s19, 4294967040  ;;  %s439_s21 = scalar_lea.vmem [#allocation7], %s2734_s14  ;;  %s445_s25 = scalar_lea.sflag [#allocation9], %s426_s17 }
  0xfe   : > { %s448_s8 = scalar_lea.vmem [#allocation8], %s2734_s14 }
  0xff   : > { %2310 = dma.done.wait (%p2982_p8), %s445_s25, 128  }
 0x100   : > { %2312 = vsyncadd (%p2982_p8), %s445_s25, 4294967168  ;;  %p2983_p12 = scmp.eq.s32.totalorder %s2436_s13, 0 }
 0x102   : > { %2314 = dma.done.wait (%p2983_p12), [#allocation9], 512   ;;  %p2984_p5 = pmov %p2983_p12 }
 0x104   : > { %2316 = vsyncadd (%p2984_p5), [#allocation9], 4294966784  ;;  %p2985_p2 = pmov %p2984_p5 }
 0x106   : > { %2318 = dma.done.wait (%p2985_p2), [#allocation12], 1024   ;;  %p2986_p4 = pmov %p2985_p2 }
 0x107   : > { %p2987_p0 = pmov %p2985_p2 }
 0x108   : > { %2320 = vsyncadd (%p2986_p4), [#allocation12], 4294966272 }
 0x109   : > { %2322 = dma.done.wait (%p2987_p0), [#allocation15], 512   ;;  %p2988_p13 = pmov %p2987_p0 }
 0x10a   : > { %v2355_v0 = vmov 0.0|0.0   ;;  %vm2356_vm0 = vmmov 0   ;;  %v2357_v1 = vmov 0.0   ;;  %v518_v2 = vld [vmem:[#allocation10] sm:$0xff]  ;;  %v519_v3 = vld [vmem:[#allocation10 + $0x8] sm:$0xff]  ;;  %v520_v7 = vld [vmem:[#allocation10 + $0x10] sm:$0xff] }
 0x10b   : > { %2324 = vsyncadd (%p2988_p13), [#allocation15], 4294966784  ;;  %1872 = vmatprep.subr.bf16.mxu0 %v2355_v0  ;;  %1878 = vmatprep.subr.bf16.mxu1 %v2355_v0  ;;  %v596_v4 = vld [vmem:[#allocation11] sm:$0xff]  ;;  %v1873_v5 = vpack.c.bf16 %v519_v3, %v518_v2  ;;  %v597_v6 = vld [vmem:[#allocation11 + $0x8] sm:$0xff]  ;;  %vm522_vm1 = vcmask 261120   ;;  %vm750_vm2 = vcmask 64512  }
 0x10c   : > { %1796 = vmatprep.mubr.msk.f32.mxu0 %vm2356_vm0, %v2357_v1  ;;  %1807 = vmatprep.mubr.msk.f32.mxu1 %vm2356_vm0, %v2357_v1  ;;  %v521_v8 = vld [vmem:[#allocation10 + $0x18] sm:$0xff]  ;;  %v1879_v9 = vpack.c.bf16 %v597_v6, %v596_v4  ;;  %v598_v10 = vld [vmem:[#allocation11 + $0x10] sm:$0xff]  ;;  %v673_v14 = vld [vmem:[#allocation13] sm:$0xff]  ;;  %s2358_s15 = smov 120   ;;  %s2359_s27 = smov 112   ;;  %vm1429_vm4 = vcmask 130048  }
 0x10d   : > { %v599_v11 = vld [vmem:[#allocation11 + $0x18] sm:$0xff]  ;;  %1874 = vmatpush3.bf16.msra.mxu0 %v1873_v5  ;;  %v1876_v12 = vpack.c.bf16 %v521_v8, %v520_v7  ;;  %v674_v15 = vld [vmem:[#allocation13 + $0x8] sm:$0xff]  ;;  %v675_v19 = vld [vmem:[#allocation13 + $0x10] sm:$0xff]  ;;  %s2360_s28 = smov 104   ;;  %s2361_s4 = smov 8   ;;  %vm1431_vm5 = vcmask 195584  }
 0x10e   : > { %1875 = vmatprep.subr.bf16.mxu0 %v2355_v0  ;;  %1880 = vmatpush3.bf16.msra.mxu1 %v1879_v9  ;;  %v1882_v13 = vpack.c.bf16 %v599_v11, %v598_v10  ;;  %v514_v16 = vld [vmem:[%s421_s1] sm:$0xff]  ;;  %v1885_v17 = vpack.c.bf16 %v674_v15, %v673_v14  ;;  %v515_v18 = vld [vmem:[%s430_s29] sm:$0xff]  ;;  %s2362_s20 = smov 16   ;;  %s2363_s26 = smov 24  }
 0x10f   : > { %1881 = vmatprep.subr.bf16.mxu1 %v2355_v0  ;;  %v676_v20 = vld [vmem:[#allocation13 + $0x18] sm:$0xff]  ;;  %v516_v22 = vld [vmem:[%s439_s21] sm:$0xff]  ;;  %s2989_s30 = sld [smem:[#allocation27_spill]]  ;;  %s2990_s22 = sld [smem:[#allocation32_spill]] }
 0x110   : > { %v1888_v21 = vpack.c.bf16 %v676_v20, %v675_v19  ;;  %v517_v29 = vld [vmem:[%s448_s8] sm:$0xff]  ;;  %s1749_s24 = sshll.u32 %s2436_s13, 7  ;;  %s513_s9 = scalar_lea.vmem [#allocation16], %s2734_s14 }
 0x111   : > { %1877 = vmatpush3.bf16.msra.mxu0 %v1876_v12  ;;  %vm827_vm3 = vcmp.eq.f32.partialorder %v517_v29, 0.0  ;;  %s1532_s16 = sshll.u32 %s513_s9, 4  ;;  %s2991_s19 = sld [smem:[#allocation33_spill]]  ;;  %s2871_s16 = int_to_ptr.vmem [resolvable:$true] %s1532_s16 }
 0x112   : > { %1883 = vmatpush3.bf16.msra.mxu1 %v1882_v13  ;;  %1884 = vmatprep.subr.bf16.mxu0 %v2355_v0  ;;  %s1519_s21 = scalar_lea.sflag [#allocation4], %s2731_s5  ;;  %s2257_s25 = scalar_lea.vmem %s2871_s16, 128 }
 0x113   : > { %1821 = vmatprep.subr.mxu1 %v2357_v1  ;;  %p2258_p7 = scmp.ne.s32.totalorder %s2871_s16, %s2257_s25  ;;  %s2364_s13 = smov [#allocation16]  }
 0x114   : > { %1797 = vmatmul.mubr.msk.f32.vlgmr.msra.gmra.mrb[0].mxu0 %vm522_vm1, %v514_v16  ;;  %s2261_s14 = sshll.u32 %s2364_s13, 4  ;;  %s2262_s14 = int_to_ptr.vmem [resolvable:$false] %s2261_s14 }
 0x115   : > { %1886 = vmatpush3.bf16.msra.mxu0 %v1885_v17  ;;  %1808 = vmatmul.mubr.msk.f32.vlgmr.msra.gmra.mrb[0].mxu1 %vm522_vm1, %v515_v18  ;;  %p2992_p9 = scmp.ne.s32.totalorder %s2989_s30, 0  ;;  %s2263_s8 = scalar_lea.vmem %s2262_s14, 256 }
 0x116   : > { %1887 = vmatprep.subr.bf16.mxu0 %v2355_v0  ;;  %1818 = vmatprep.mubr.msk.f32.mxu0 %vm2356_vm0, %v2357_v1  ;;  %p2264_p3 = scmp.lt.s32.totalorder %s2871_s16, %s2262_s14  ;;  %p2265_p6 = scmp.lt.s32.totalorder %s2263_s8, %s2257_s25 }
 0x117   : > { %1823 = vmatprep.mubr.msk.f32.mxu1 %vm2356_vm0, %v2357_v1  ;;  %s2869_s29 = scalar_lea.hbm %s2991_s19, %s1749_s24  ;;  %p2259_p11 = pnand %p2258_p7, %p2992_p9 }
 0x118   : > { %p2266_p1 = por %p2265_p6, %p2264_p3 }
 0x119   : > { %1889 = vmatpush3.bf16.msra.mxu0 %v1888_v21  ;;  %p2260_p10 = pneg %p2259_p11 }
 0x11a   : > { %1841 = vmatprep.subr.mxu0 %v2357_v1 }
 0x11b   : > { %p2267_p8 = pnand %p2266_p1, %p2260_p10 }
 0x11c   : > { %1819 = vmatmul.mubr.msk.f32.vlgmr.msra.gmra.mrb[2].mxu0 %vm522_vm1, %v516_v22 }
 0x11d   : > { %1843 = vmatprep.mubr.msk.f32.mxu0 %vm2356_vm0, %v2357_v1 }
 0x1e7   : > { %v2793_v23 = vpop.f32.mrb[0].mxu0 }
 0x1e8   : > { %v1798_v24 = vpop.f32.mrb[1].mxu0  ;;  %v669_v25 = vpop.f32.mrb[0].mxu1 }
 0x1e9   : > { %v1809_v26 = vpop.f32.mrb[1].mxu1  ;;  %916 = vrot.lane.b32.xlu1 %v669_v25, %s2358_s15  ;;  %1822 = vmatpush3.xpose.msk.msra.mxu1 %vm750_vm2, %v669_v25 }
 0x1ea   : > { %1826 = vmatprep.subr.mxu1 %v2357_v1 }
 0x1ef   : > { %v746_v27 = vpop.f32.mrb[2].mxu0 }
 0x1f0   : > { %914 = vrot.lane.b32.xlu1 %v746_v27, %s2358_s15  ;;  %v1820_v28 = vpop.f32.mrb[3].mxu0  ;;  %1824 = vmatmul.mubr.msk.f32.vlgmr.msra.gmra.mrb[2].mxu1 %vm750_vm2, %v746_v27 }
 0x1f1   : > { %1827 = vmatpush3.msra.mxu1 %v2793_v23  ;;  %1828 = vmatprep.mubr.msk.f32.mxu1 %vm2356_vm0, %v2357_v1 }
 0x1f2   : > { %1831 = vmatprep.subr.mxu1 %v2357_v1 }
 0x1f4   : > { %1082 = vrot.lane.b32.xlu1 %v746_v27, %s2359_s27 }
 0x1f8   : > { %1251 = vrot.lane.b32.xlu1 %v669_v25, %s2360_s28 }
 0x1fc   : > { %1249 = vrot.lane.b32.xlu1 %v746_v27, %s2360_s28 }
 0x25b   : > { %v917_v40 = vpop.permute.xlu1 %916 }
 0x262   : > { %v915_v41 = vpop.permute.xlu1 %914 }
 0x266   : > { %v1083_v42 = vpop.permute.xlu1 %1082 }
 0x26a   : > { %v1252_v45 = vpop.permute.xlu1 %1251 }
 0x26e   : > { %v1250_v47 = vpop.permute.xlu1 %1249 }
 0x2c3   : > { %v823_v30 = vpop.f32.mrb[2].mxu1 }
 0x2c4   : > { %v828_v31 = vsel %vm827_vm3, -1e+20, %v823_v30  ;;  %v1825_v32 = vpop.f32.mrb[3].mxu1 }
 0x2c5   : > { %v829_v33 = vmul.f32 0.17677669, %v828_v31  ;;  %v1433_v31 = vld [vmem:[#allocation14] sm:$0xff]  ;;  %v1434_v32 = vld [vmem:[#allocation14 + $0x8] sm:$0xff] }
 0x2c7   : > { %v830_v34 = vsel %vm750_vm2, %v829_v33, -inf }
 0x2c8   : > { %831 = vmax.xlane.f32.xlu0 %v830_v34  ;;  %v1435_v34 = vld [vmem:[#allocation14 + $0x10] sm:$0xff] }
 0x355   : > { %v832_v35 = vpop.xlane.xlu0 %831 }
 0x356   : > { %v833_v36 = vsub.f32 %v829_v33, %v832_v35  ;;  %v1891_v33 = vpack.c.bf16 %v1434_v32, %v1433_v31  ;;  %v1436_v35 = vld [vmem:[#allocation14 + $0x18] sm:$0xff] }
 0x358   : > { %v834_v37 = vmul.f32 1.442695, %v833_v36  ;;  %v1894_v36 = vpack.c.bf16 %v1436_v35, %v1435_v34 }
 0x35a   : > { %2009 = vpow2.f32 %v834_v37 }
 0x364   : > { %v2010_v38 = vpop.eup %2009 }
 0x365   : > { %v836_v39 = vsel %vm750_vm2, %v2010_v38, 0.0 }
 0x366   : > { %837 = vadd.xlane.f32.xlu0 %v836_v39 }
 0x37c   : > { %1084 = vrot.lane.b32.xlu0 %v669_v25, %s2359_s27 }
 0x3f3   : > { %v838_v43 = vpop.xlane.xlu0 %837 }
 0x3f4   : > { %2011 = vrcp.f32 %v838_v43 }
 0x3f7   : > { %v1085_v44 = vpop.permute.xlu0 %1084 }
 0x3f8   : > { %1842 = vmatpush3.xpose.msk.msra.mxu0 %vm750_vm2, %v1085_v44 }
 0x3f9   : > { %1851 = vmatprep.subr.mxu0 %v2357_v1 }
 0x3fb   : > { %1844 = vmatmul.mubr.msk.f32.vlgmr.msra.gmra.mrb[4].mxu0 %vm750_vm2, %v1083_v42 }
 0x3fc   : > { %1852 = vmatpush3.xpose.msk.msra.mxu0 %vm750_vm2, %v1252_v45  ;;  %1853 = vmatprep.mubr.msk.f32.mxu0 %vm2356_vm0, %v2357_v1 }
 0x3fd   : > { %1890 = vmatprep.subr.bf16.mxu0 %v2355_v0 }
 0x3fe   : > { %v2012_v46 = vpop.eup %2011 }
 0x3ff   : > { %v840_v48 = vmul.f32 %v2012_v46, %v2010_v38  ;;  %1854 = vmatmul.mubr.msk.f32.vlgmr.msra.gmra.mrb[6].mxu0 %vm750_vm2, %v1250_v47  ;;  %v1746_v47 = vld [vmem:[%s2990_s22] ss:$0 sm:$0xff] }
 0x400   : > { %1869 = vmatprep.mubr.msk.f32.mxu0 %vm2356_vm0, %v2357_v1  ;;  %1892 = vmatpush3.bf16.msra.mxu0 %v1891_v33 }
 0x401   : > { %1829 = vmatmul.mubr.msk.f32.vlgmr.msra.gmra.mrb[4].mxu1 %vm750_vm2, %v840_v48  ;;  %1893 = vmatprep.subr.bf16.mxu0 %v2355_v0 }
 0x402   : > { %1832 = vmatpush3.xpose.msk.msra.mxu1 %vm750_vm2, %v917_v40  ;;  %1833 = vmatprep.mubr.msk.f32.mxu1 %vm2356_vm0, %v2357_v1 }
 0x403   : > { %1836 = vmatprep.subr.mxu1 %v2357_v1 }
 0x404   : > { %1895 = vmatpush3.bf16.msra.mxu0 %v1894_v36 }
 0x405   : > { %1834 = vmatmul.mubr.msk.f32.vlgmr.msra.gmra.mrb[6].mxu1 %vm750_vm2, %v915_v41 }
 0x406   : > { %1838 = vmatprep.mubr.msk.f32.mxu1 %vm2356_vm0, %v2357_v1 }
 0x4ce   : > { %v1156_v49 = vpop.f32.mrb[4].mxu0 }
 0x4cf   : > { %v1160_v50 = vsel %vm827_vm3, -1e+20, %v1156_v49  ;;  %v1845_v51 = vpop.f32.mrb[5].mxu0 }
 0x4d0   : > { %v1161_v52 = vmul.f32 0.17677669, %v1160_v50 }
 0x4d2   : > { %v1323_v53 = vpop.f32.mrb[6].mxu0  ;;  %v1162_v54 = vsel %vm750_vm2, %v1161_v52, -inf }
 0x4d3   : > { %1163 = vmax.xlane.f32.xlu0 %v1162_v54  ;;  %v1855_v55 = vpop.f32.mrb[7].mxu0  ;;  %v1327_v59 = vsel %vm827_vm3, -1e+20, %v1323_v53 }
 0x4d4   : > { %v2833_v56 = vpop.f32.mrb[4].mxu1  ;;  %v1328_v63 = vmul.f32 0.17677669, %v1327_v59 }
 0x4d5   : > { %v1830_v57 = vpop.f32.mrb[5].mxu1 }
 0x4d6   : > { %v1329_v3 = vsel %vm750_vm2, %v1328_v63, -inf }
 0x4d8   : > { %v988_v58 = vpop.f32.mrb[6].mxu1 }
 0x4d9   : > { %v992_v60 = vsel %vm827_vm3, -1e+20, %v988_v58  ;;  %v1835_v61 = vpop.f32.mrb[7].mxu1 }
 0x4da   : > { %v993_v62 = vmul.f32 0.17677669, %v992_v60 }
 0x4dc   : > { %v994_v2 = vsel %vm750_vm2, %v993_v62, -inf }
 0x4dd   : > { %995 = vmax.xlane.f32.xlu1 %v994_v2 }
 0x4e1   : > { %1330 = vmax.xlane.f32.xlu1 %v1329_v3 }
 0x560   : > { %v1164_v4 = vpop.xlane.xlu0 %1163 }
 0x561   : > { %v1165_v5 = vsub.f32 %v1161_v52, %v1164_v4 }
 0x563   : > { %v1166_v6 = vmul.f32 1.442695, %v1165_v5 }
 0x565   : > { %2013 = vpow2.f32 %v1166_v6 }
 0x56a   : > { %v996_v7 = vpop.xlane.xlu1 %995 }
 0x56b   : > { %v997_v15 = vsub.f32 %v993_v62, %v996_v7 }
 0x56d   : > { %v998_v16 = vmul.f32 1.442695, %v997_v15 }
 0x56e   : > { %v1331_v8 = vpop.xlane.xlu1 %1330 }
 0x56f   : > { %v2014_v9 = vpop.eup %2013  ;;  %v1332_v10 = vsub.f32 %v1328_v63, %v1331_v8 }
 0x570   : > { %v1168_v11 = vsel %vm750_vm2, %v2014_v9, 0.0 }
 0x571   : > { %v1333_v12 = vmul.f32 1.442695, %v1332_v10  ;;  %1169 = vadd.xlane.f32.xlu0 %v1168_v11 }
 0x573   : > { %2015 = vpow2.f32 %v1333_v12 }
 0x574   : > { %2017 = vpow2.f32 %v998_v16 }
 0x57d   : > { %v2016_v13 = vpop.eup %2015 }
 0x57e   : > { %v1335_v14 = vsel %vm750_vm2, %v2016_v13, 0.0  ;;  %v2018_v17 = vpop.eup %2017 }
 0x57f   : > { %1336 = vadd.xlane.f32.xlu1 %v1335_v14  ;;  %v1000_v18 = vsel %vm750_vm2, %v2018_v17, 0.0 }
 0x587   : > { %1006 = vrot.lane.b32.xlu0 %v2793_v23, %s2358_s15 }
 0x590   : > { %1173 = vrot.lane.b32.xlu1 %v2793_v23, %s2359_s27 }
 0x5b4   : > { %1001 = vadd.xlane.f32.xlu1 %v1000_v18 }
 0x5c5   : > { %1340 = vrot.lane.b32.xlu1 %v2793_v23, %s2360_s28 }
 0x5fe   : > { %v1170_v19 = vpop.xlane.xlu0 %1169 }
 0x602   : > { %v1007_v20 = vpop.permute.xlu0 %1006 }
 0x603   : > { %1837 = vmatpush3.msra.mxu1 %v1007_v20 }
 0x604   : > { %1846 = vmatprep.subr.mxu1 %v2357_v1 }
 0x60c   : > { %v1337_v21 = vpop.xlane.xlu1 %1336 }
 0x610   : > { %v1174_v22 = vpop.permute.xlu1 %1173 }
 0x641   : > { %v1002_v24 = vpop.xlane.xlu1 %1001 }
 0x642   : > { %2019 = vrcp.f32 %v1002_v24 }
 0x643   : > { %2021 = vrcp.f32 %v1170_v19 }
 0x644   : > { %2023 = vrcp.f32 %v1337_v21 }
 0x645   : > { %v1341_v29 = vpop.permute.xlu1 %1340 }
 0x64c   : > { %v2020_v25 = vpop.eup %2019 }
 0x64d   : > { %v1004_v26 = vmul.f32 %v2020_v25, %v2018_v17  ;;  %v2022_v27 = vpop.eup %2021 }
 0x64e   : > { %v1172_v23 = vmul.f32 %v2022_v27, %v2014_v9  ;;  %v2024_v28 = vpop.eup %2023 }
 0x64f   : > { %1839 = vmatmul.mubr.msk.f32.vlgmr.msra.gmra.mrb[8].mxu1 %vm750_vm2, %v1004_v26  ;;  %v1339_v30 = vmul.f32 %v2024_v28, %v2016_v13 }
 0x650   : > { %1847 = vmatpush3.msra.mxu1 %v1174_v22  ;;  %1848 = vmatprep.mubr.msk.f32.mxu1 %vm2356_vm0, %v2357_v1 }
 0x651   : > { %1856 = vmatprep.subr.mxu1 %v2357_v1 }
 0x653   : > { %1849 = vmatmul.mubr.msk.f32.vlgmr.msra.gmra.mrb[10].mxu1 %vm750_vm2, %v1172_v23 }
 0x654   : > { %1857 = vmatpush3.msra.mxu1 %v1341_v29  ;;  %1858 = vmatprep.mubr.msk.f32.mxu1 %vm2356_vm0, %v2357_v1 }
 0x657   : > { %1859 = vmatmul.mubr.msk.f32.vlgmr.msra.gmra.mrb[12].mxu1 %vm750_vm2, %v1339_v30 }
 0x722   : > { %v1078_v37 = vpop.f32.mrb[8].mxu1 }
 0x723   : > { %1417 = vrot.lane.b32.xlu0 %v1078_v37, %s2361_s4  ;;  %v1840_v38 = vpop.f32.mrb[9].mxu1 }
 0x726   : > { %v1245_v39 = vpop.f32.mrb[10].mxu1 }
 0x727   : > { %1421 = vrot.lane.b32.xlu1 %v1245_v39, %s2362_s20  ;;  %v1850_v1 = vpop.f32.mrb[11].mxu1 }
 0x72a   : > { %v1412_v40 = vpop.f32.mrb[12].mxu1 }
 0x72b   : > { %1425 = vrot.lane.b32.xlu0 %v1412_v40, %s2363_s26  ;;  %v1860_v41 = vpop.f32.mrb[13].mxu1 }
 0x795   : > { %v1418_v42 = vpop.permute.xlu0 %1417 }
 0x796   : > { %v1428_v43 = vsel %vm750_vm2, %v2833_v56, %v1418_v42 }
 0x799   : > { %v1422_v0 = vpop.permute.xlu1 %1421 }
 0x79a   : > { %v1430_v44 = vsel %vm1429_vm4, %v1428_v43, %v1422_v0 }
 0x79d   : > { %v1426_v45 = vpop.permute.xlu0 %1425 }
 0x79e   : > { %v1432_v46 = vsel %vm1431_vm5, %v1430_v44, %v1426_v45 }
 0x79f   : > { %1870 = vmatmul.mubr.msk.f32.vlgmr.msra.gmra.mrb[8].mxu0 %vm522_vm1, %v1432_v46 }
 0x872   : > { %v1513_v48 = vpop.f32.mrb[8].mxu0 }
 0x873   : > { %v1514_v49 = vadd.f32 %v1746_v47, %v1513_v48  ;;  %v1871_v50 = vpop.f32.mrb[9].mxu0 }
 0x875   : > { %1517 = vst.msk [vmem:[%s513_s9] sm:$0xff] %vm522_vm1, %v1514_v49 }
 0x876   : > { %2270 = shalt.err (!%p2267_p8)
}
 0x877   : > { %s2271_s5 = scalar_lea.hbm %s2869_s29, 128  ;;  %s2275_s28 = scalar_lea.hbm %s2991_s19, 256 }
 0x878   : > { %p2272_p12 = scmp.ne.s32.totalorder %s2869_s29, %s2271_s5  ;;  %p2276_p4 = scmp.lt.u32.totalorder %s2869_s29, %s2991_s19 }
 0x879   : > { %p2277_p0 = scmp.lt.u32.totalorder %s2275_s28, %s2271_s5  ;;  %p2279_p7 = scmp.lt.u32.totalorder %s2271_s5, %s2869_s29 }
 0x87a   : > { %p2273_p5 = pnand %p2272_p12, %p2992_p9 }
 0x87b   : > { %p2278_p13 = por %p2277_p0, %p2276_p4 }
 0x87c   : > { %p2274_p2 = pneg %p2273_p5 }
 0x87d   : > { %p2280_p11 = por %p2279_p7, %p2278_p13 }
 0x87f   : > { %p2281_p10 = pnand %p2280_p11, %p2274_p2 }
 0x881   : > { %2284 = shalt.err (!%p2281_p10)
}
 0x882   : > { %1920 = dma.vmem_to_hbm [thread:$0]  (%p2992_p9), %s2871_s16, 128, %s2869_s29, %s1519_s21  }
 0x883 PF: > { %s2993_s26 = sld [smem:[#allocation24_spill]]  ;;  %s2994_s18 = sld [smem:[#allocation25_spill]] }
 0x884   : > { %p2996_p6 = scmp.ge.s32.totalorder %s2343_s12, 2 }
 0x889   : > { %s1544_s23 = sand.u32 1, %s2993_s26   ;;  %p2995_p3 = scmp.ne.s32.totalorder %s2994_s18, 0 }
 0x88a   : > { %s1545_s22 = scalar_lea.sflag [#allocation4], %s1544_s23 }
 0x88b   : > { %p1949_p1 = pnand %p2996_p6, %p2995_p3 }
 0x88d   : > { %2326 = dma.done.wait (!%p1949_p1), %s1545_s22, 128  }
 0x88e   : > { %2328 = vsyncadd (!%p1949_p1), %s1545_s22, 4294967168  ;;  %s2997_s12 = sld [smem:[#allocation26_spill]]  ;;  %s2998_s24 = sld [smem:[#allocation28_spill]] }
 0x88f   : > { %s2999_s30 = smov %s2335_s10  ;;  %s3000_s10 = smov %s2339_s11 }
 0x894   : > { %p30_p8 = scmp.ge.s32.totalorder %s2997_s12, 4   ;;  %s3001_s11 = smov %s2998_s24 }
 0x896   :  { %32 = sbr.rel (!%p30_p8) target bundleno = 17 (0x11), region = 154 }
 0x89d   :  { %1550 = vsyncpa [#allocation3], 1 }
 0x89e   :  { %1552 = vsyncpa [#allocation3 + $0x1], 1 }
 0x89f   :  { %1553 = vsyncpa [#allocation6], 1 }
 0x8a0   :  { %1555 = vsyncpa [#allocation6 + $0x1], 1 }
 0x8a1   :  { %1556 = vsyncpa [#allocation9], 1 }
 0x8a2   :  { %1558 = vsyncpa [#allocation9 + $0x1], 1 }
 0x8a3   :  { %1559 = vsyncpa [#allocation12], 1 }
 0x8a4   :  { %1560 = vsyncpa [#allocation15], 1 }
 0x8a5   :  { %1561 = vsyncpa [#allocation4], 1 }
 0x8a6   :  { %1563 = vsyncpa [#allocation4 + $0x1], 1 }

</bundles_post_ra>
